<compile_context>
chip_gen: v6e
topology: v6e:2x2x1
jax: 0.10.0
libtpu: 0.0.40
codegen_flags: <defaults>
</compile_context>

<pallas_src>
import functools

import jax
import jax.numpy as jnp
from jax import lax
from jax.experimental import pallas as pl
from jax.experimental.pallas import tpu as pltpu


def _round_up(x, m):
    return (x + m - 1) // m * m


def _pick_nb(n, target_steps):
    """Largest divisor of n such that n // d >= target_steps.

    Gives the shortest grid that still has >= target_steps fat steps (so v7x
    megacore can shard them); falls back to n (grid=1) when n < target_steps.
    For N=50, target=2 this yields nb=25 (grid=2).
    """
    if n < target_steps:
        return n
    best = 1
    for d in range(1, n // target_steps + 1):
        if n % d == 0:
            best = d
    return best


def _conv_bn_relu_kernel(x_ref, w_ref, shift_ref, o_ref,
                         *, k_size, nb, tl, n_full, tail):
    # x_ref:     (nb, C_in, L_in_pad)  conv-zero-padded, lane-padded input block
    # w_ref:     (K, C_out, C_in)      conv weights with BN scale folded in
    # shift_ref: (C_out, 1)            fused BN shift (conv bias folded in)
    # o_ref:     (nb, C_out, L_out)
    # Resident per-tap weight tiles (tiny). K-tap accumulation avoids the
    # per-chunk sublane repack an im2col concatenate would cost.
    w_taps = [w_ref[k] for k in range(k_size)]
    c_out = w_ref.shape[1]
    # Hoisted broadcast: JAX does not CSE broadcast_in_dim inside the loops.
    shift_b = jnp.broadcast_to(shift_ref[...], (c_out, tl))

    def compute_chunk(nidx, start, chunk, shift_c):
        # nidx: (possibly dynamic) batch element within the block.
        # start: lane offset (128-aligned for full chunks); chunk: static length.
        y = jnp.dot(w_taps[0], x_ref[nidx, :, pl.ds(start, chunk)],
                    preferred_element_type=jnp.float32)
        for k in range(1, k_size):
            y = y + jnp.dot(w_taps[k], x_ref[nidx, :, pl.ds(start + k, chunk)],
                            preferred_element_type=jnp.float32)
        y = y + shift_c                       # fused BN (eval); scale is in w
        # ReLU; Dropout(0.1) == identity in eval mode.
        o_ref[nidx, :, pl.ds(start, chunk)] = jnp.maximum(y, 0.0).astype(o_ref.dtype)

    def batch_body(nidx, carry):
        if n_full > 0:
            def chunk_body(j, c):
                compute_chunk(nidx, pl.multiple_of(j * tl, 128), tl, shift_b)
                return c
            lax.fori_loop(0, n_full, chunk_body, 0, unroll=n_full <= 8)
        if tail > 0:                          # static, possibly masked tail
            compute_chunk(nidx, n_full * tl, tail, shift_b[:, :tail])
        return carry

    # fori_loop (not a static Python loop) bounds live vregs to one batch
    # element's worth even when nb is large (fat grid steps).
    lax.fori_loop(0, nb, batch_body, 0)


def conv_block_forward(x, w, b, gamma, beta, running_mean, running_var,
                       *, padding=1, eps=1e-5, target_grid_steps=2, chunk=1024,
                       compute_dtype=jnp.bfloat16, out_dtype=None):
    """x: (N, C_in, L), w: (C_out, C_in, K) -> (N, C_out, L_out).

    compute_dtype=bf16 (default) halves input/weight HBM traffic; out_dtype=bf16
    additionally halves output traffic. MXU accumulation and BN/ReLU stay f32.
    """
    n, c_in, l = x.shape
    c_out, _, k_size = w.shape
    l_out = l + 2 * padding - k_size + 1               # stride = 1
    out_dtype = x.dtype if out_dtype is None else out_dtype

    # Fat batch grouping: shortest grid with >= target_grid_steps steps.
    nb = _pick_nb(n, target_grid_steps)

    # Length tiling: 128-aligned chunks of `tl` lanes + a static tail.
    tl = max(128, _round_up(min(chunk, _round_up(l_out, 128)), 128))
    n_full = l_out // tl
    tail = l_out - n_full * tl

    # Conv zero-padding; pad the input length up to a multiple of 128 for
    # lane-aligned layout (extra right zeros are never read as data).
    l_in = _round_up(l + 2 * padding, 128)
    x_pad = jnp.pad(x, ((0, 0), (0, 0), (padding, l_in - l - padding)))
    x_pad = x_pad.astype(compute_dtype)

    # Fold BatchNorm (eval stats): scale into the conv weights, bias+mean+beta
    # into a per-channel shift.
    scale = gamma / jnp.sqrt(running_var + eps)
    shift = beta + (b - running_mean) * scale
    w_scaled = (w * scale[:, None, None]).astype(compute_dtype)   # (C_out, C_in, K)
    w_taps = jnp.transpose(w_scaled, (2, 0, 1))                   # (K, C_out, C_in)
    shift2 = shift.reshape(c_out, 1).astype(jnp.float32)

    kernel = functools.partial(_conv_bn_relu_kernel, k_size=k_size, nb=nb,
                               tl=tl, n_full=n_full, tail=tail)

    return pl.pallas_call(
        kernel,
        out_shape=jax.ShapeDtypeStruct((n, c_out, l_out), out_dtype),
        grid=(n // nb,),
        in_specs=[
            pl.BlockSpec((nb, c_in, l_in), lambda i: (i, 0, 0)),
            pl.BlockSpec((k_size, c_out, c_in), lambda i: (0, 0, 0)),
            pl.BlockSpec((c_out, 1), lambda i: (0, 0)),
        ],
        out_specs=pl.BlockSpec((nb, c_out, l_out), lambda i: (i, 0, 0)),
        compiler_params=pltpu.CompilerParams(
            dimension_semantics=("parallel",),       # megacore sharding on v7x
            vmem_limit_bytes=32 * 1024 * 1024),      # v7x-safe scoped budget
    )(x_pad, w_taps, shift2)


def _reference(x, w, b, gamma, beta, running_mean, running_var, *, padding=1, eps=1e-5):
    y = lax.conv_general_dilated(
        x, w, window_strides=(1,), padding=[(padding, padding)],
        dimension_numbers=("NCH", "OIH", "NCH"))
    y = y + b[None, :, None]
    y = (y - running_mean[None, :, None]) / jnp.sqrt(running_var[None, :, None] + eps)
    y = gamma[None, :, None] * y + beta[None, :, None]
    return jnp.maximum(y, 0.0)


if __name__ == "__main__":
    # Small shapes consistent with the module (original input was (50, 3, 6000)).
    C_IN, C_OUT, K, PAD = 3, 8, 3, 1

    key = jax.random.PRNGKey(0)
    k_w, k_b, k_g, k_be, k_m, k_v, k_x1, k_x2 = jax.random.split(key, 8)

    fan_in = C_IN * K
    bound = 1.0 / (fan_in ** 0.5)
    w = jax.random.uniform(k_w, (C_OUT, C_IN, K), jnp.float32, -bound, bound)
    b = jax.random.uniform(k_b, (C_OUT,), jnp.float32, -bound, bound)
    gamma = jax.random.uniform(k_g, (C_OUT,), jnp.float32, 0.8, 1.2)
    beta = jax.random.uniform(k_be, (C_OUT,), jnp.float32, -0.1, 0.1)
    running_mean = jax.random.uniform(k_m, (C_OUT,), jnp.float32, -0.1, 0.1)
    running_var = jax.random.uniform(k_v, (C_OUT,), jnp.float32, 0.5, 1.5)

    # Case 1: tiny (2, 3, 64) -- single static-tail chunk, nb=1, grid=2, f32 exact.
    x1 = jax.random.normal(k_x1, (2, C_IN, 64), jnp.float32)
    ref1 = _reference(x1, w, b, gamma, beta, running_mean, running_var, padding=PAD)
    out1 = jax.block_until_ready(conv_block_forward(
        x1, w, b, gamma, beta, running_mean, running_var, padding=PAD,
        compute_dtype=jnp.float32))
    assert out1.shape == ref1.shape
    assert jnp.allclose(out1, ref1, atol=1e-5, rtol=1e-5)

    # Case 2: (4, 3, 2600) -- exercises nb=2 batch grouping, the 1024-lane chunk
    # loop and the masked static tail.
    x2 = jax.random.normal(k_x2, (4, C_IN, 2600), jnp.float32)
    ref2 = _reference(x2, w, b, gamma, beta, running_mean, running_var, padding=PAD)

    out2_f32 = jax.block_until_ready(conv_block_forward(
        x2, w, b, gamma, beta, running_mean, running_var, padding=PAD,
        compute_dtype=jnp.float32))
    assert out2_f32.shape == ref2.shape
    assert jnp.allclose(out2_f32, ref2, atol=1e-5, rtol=1e-5)

    # Default bf16 compute + bf16 output fast path (f32 accumulation kept).
    out2_bf16 = jax.block_until_ready(conv_block_forward(
        x2, w, b, gamma, beta, running_mean, running_var, padding=PAD,
        out_dtype=jnp.bfloat16))
    assert out2_bf16.dtype == jnp.bfloat16
    assert jnp.allclose(out2_bf16.astype(jnp.float32), ref2, atol=7e-2, rtol=7e-2)

    print("KERNEL_OK")
</pallas_src>

<mosaic_0001>
module attributes {stable_mosaic.version = 11 : i64} {
  func.func @_conv_bn_relu_kernel(%arg0: i32, %arg1: memref<1x3x128xf32, #tpu.memory_space<vmem>>, %arg2: memref<3x8x3xf32, #tpu.memory_space<vmem>>, %arg3: memref<8x1xf32, #tpu.memory_space<vmem>>, %arg4: memref<1x8x64xf32, #tpu.memory_space<vmem>>) attributes {dimension_semantics = [#tpu.dimension_semantics<parallel>], iteration_bounds = array<i64: 2>, scalar_prefetch = 0 : i64, scratch_operands = 0 : i64, tpu.core_type = #tpu.core_type<tc>, window_params = [{transform_indices = @transform_0, window_bounds = array<i64: 1, 3, 128>}, {pipeline_mode = #tpu.pipeline_mode<synchronous>, transform_indices = @transform_1, window_bounds = array<i64: 3, 8, 3>}, {pipeline_mode = #tpu.pipeline_mode<synchronous>, transform_indices = @transform_2, window_bounds = array<i64: 8, 1>}, {transform_indices = @transform_3, window_bounds = array<i64: 1, 8, 64>}]} {
    %c0 = arith.constant 0 : index
    %c0_0 = arith.constant 0 : index
    %c0_1 = arith.constant 0 : index
    %0 = vector.load %arg2[%c0, %c0_0, %c0_1] : memref<3x8x3xf32, #tpu.memory_space<vmem>>, vector<1x8x3xf32>
    %1 = vector.shape_cast %0 : vector<1x8x3xf32> to vector<8x3xf32>
    %c1 = arith.constant 1 : index
    %c0_2 = arith.constant 0 : index
    %c0_3 = arith.constant 0 : index
    %2 = vector.load %arg2[%c1, %c0_2, %c0_3] : memref<3x8x3xf32, #tpu.memory_space<vmem>>, vector<1x8x3xf32>
    %3 = vector.shape_cast %2 : vector<1x8x3xf32> to vector<8x3xf32>
    %c2 = arith.constant 2 : index
    %c0_4 = arith.constant 0 : index
    %c0_5 = arith.constant 0 : index
    %4 = vector.load %arg2[%c2, %c0_4, %c0_5] : memref<3x8x3xf32, #tpu.memory_space<vmem>>, vector<1x8x3xf32>
    %5 = vector.shape_cast %4 : vector<1x8x3xf32> to vector<8x3xf32>
    %c0_6 = arith.constant 0 : index
    %c0_7 = arith.constant 0 : index
    %6 = vector.load %arg3[%c0_6, %c0_7] : memref<8x1xf32, #tpu.memory_space<vmem>>, vector<8x1xf32>
    %7 = vector.shape_cast %6 : vector<8x1xf32> to vector<8x1xf32>
    %8 = vector.broadcast %7 : vector<8x1xf32> to vector<8x128xf32>
    %c0_i32 = arith.constant 0 : i32
    %9 = vector.extract_strided_slice %8 {offsets = [0, 0], sizes = [8, 64], strides = [1, 1]} : vector<8x128xf32> to vector<8x64xf32>
    %10 = arith.index_cast %c0_i32 : i32 to index
    %c0_8 = arith.constant 0 : index
    %c0_9 = arith.constant 0 : index
    %11 = vector.load %arg1[%10, %c0_8, %c0_9] : memref<1x3x128xf32, #tpu.memory_space<vmem>>, vector<1x3x64xf32>
    %12 = vector.shape_cast %11 : vector<1x3x64xf32> to vector<3x64xf32>
    %cst = arith.constant dense<0.000000e+00> : vector<8x64xf32>
    %13 = tpu.matmul %1, %12, %cst {dimension_numbers = #tpu.dot_dimension_numbers<[1], [0], [0], [1], [0, 0, 1, 1], [], []>} : vector<8x3xf32>, vector<3x64xf32>, vector<8x64xf32> -> vector<8x64xf32>
    %14 = arith.index_cast %c0_i32 : i32 to index
    %c0_10 = arith.constant 0 : index
    %c1_11 = arith.constant 1 : index
    %15 = vector.load %arg1[%14, %c0_10, %c1_11] : memref<1x3x128xf32, #tpu.memory_space<vmem>>, vector<1x3x64xf32>
    %16 = vector.shape_cast %15 : vector<1x3x64xf32> to vector<3x64xf32>
    %cst_12 = arith.constant dense<0.000000e+00> : vector<8x64xf32>
    %17 = tpu.matmul %3, %16, %cst_12 {dimension_numbers = #tpu.dot_dimension_numbers<[1], [0], [0], [1], [0, 0, 1, 1], [], []>} : vector<8x3xf32>, vector<3x64xf32>, vector<8x64xf32> -> vector<8x64xf32>
    %18 = arith.addf %13, %17 : vector<8x64xf32>
    %19 = arith.index_cast %c0_i32 : i32 to index
    %c0_13 = arith.constant 0 : index
    %c2_14 = arith.constant 2 : index
    %20 = vector.load %arg1[%19, %c0_13, %c2_14] : memref<1x3x128xf32, #tpu.memory_space<vmem>>, vector<1x3x64xf32>
    %21 = vector.shape_cast %20 : vector<1x3x64xf32> to vector<3x64xf32>
    %cst_15 = arith.constant dense<0.000000e+00> : vector<8x64xf32>
    %22 = tpu.matmul %5, %21, %cst_15 {dimension_numbers = #tpu.dot_dimension_numbers<[1], [0], [0], [1], [0, 0, 1, 1], [], []>} : vector<8x3xf32>, vector<3x64xf32>, vector<8x64xf32> -> vector<8x64xf32>
    %23 = arith.addf %18, %22 : vector<8x64xf32>
    %24 = arith.addf %23, %9 : vector<8x64xf32>
    %cst_16 = arith.constant 0.000000e+00 : f32
    %25 = vector.broadcast %cst_16 : f32 to vector<8x64xf32>
    %26 = arith.maximumf %24, %25 : vector<8x64xf32>
    %27 = arith.index_cast %c0_i32 : i32 to index
    %c0_17 = arith.constant 0 : index
    %c0_18 = arith.constant 0 : index
    %28 = vector.load %arg4[%27, %c0_17, %c0_18] : memref<1x8x64xf32, #tpu.memory_space<vmem>>, vector<1x8x64xf32>
    %29 = vector.shape_cast %28 : vector<1x8x64xf32> to vector<8x64xf32>
    %30 = vector.shape_cast %26 : vector<8x64xf32> to vector<1x8x64xf32>
    tpu.vector_store %arg4[%27, %c0_17, %c0_18], %30 {strides = array<i32>} : memref<1x8x64xf32, #tpu.memory_space<vmem>>, vector<1x8x64xf32>,
    %c1_i32 = arith.constant 1 : i32
    return
  }
  func.func @transform_0(%arg0: i32) -> (i32, i32, i32) {
    %c0_i32 = arith.constant 0 : i32
    %c0_i32_0 = arith.constant 0 : i32
    %c0_i32_1 = arith.constant 0 : i32
    return %arg0, %c0_i32, %c0_i32_0 : i32, i32, i32
  }
  func.func @transform_1(%arg0: i32) -> (i32, i32, i32) {
    %c0_i32 = arith.constant 0 : i32
    %c0_i32_0 = arith.constant 0 : i32
    %c0_i32_1 = arith.constant 0 : i32
    %c0_i32_2 = arith.constant 0 : i32
    return %c0_i32, %c0_i32_0, %c0_i32_1 : i32, i32, i32
  }
  func.func @transform_2(%arg0: i32) -> (i32, i32) {
    %c0_i32 = arith.constant 0 : i32
    %c0_i32_0 = arith.constant 0 : i32
    %c0_i32_1 = arith.constant 0 : i32
    return %c0_i32, %c0_i32_0 : i32, i32
  }
  func.func @transform_3(%arg0: i32) -> (i32, i32, i32) {
    %c0_i32 = arith.constant 0 : i32
    %c0_i32_0 = arith.constant 0 : i32
    %c0_i32_1 = arith.constant 0 : i32
    return %arg0, %c0_i32, %c0_i32_0 : i32, i32, i32
  }
}

</mosaic_0001>

<bundles_post_ra>
// kernel: tpu_custom_call.1
= control target key start
LH: loop header
LB: loop body
LE: loop exit
PB: predicated region body
PF: predicated region fallthrough
CT: control target
= control target key end

     0   :  { %8 = vsyncpa [#allocation3], 0  ;;  %s769_s0 = inlined_call_operand.vmem [shape: f32[2,3,128], index: 0, kind: input, shape index: {}]   ;;  %s770_s1 = inlined_call_operand.vmem [shape: f32[3,8,3], index: 1, kind: input, shape index: {}]   ;;  %s771_s2 = inlined_call_operand.vmem [shape: f32[8,1], index: 2, kind: input, shape index: {}]   ;;  %s772_s3 = inlined_call_operand.hbm [shape: f32[2,8,64], index: 3, kind: output, shape index: {}]  }
   0x1   :  { %10 = vsyncpa [#allocation3 + $0x1], 0  ;;  %s661_s12 = smov 0   ;;  %s663_s13 = smov 0  }
   0x2   :  { %s665_s14 = smov 0   ;;  %s667_s15 = smov 0  }
   0x3 LB: > { %s682_s16 = sadd.s32 4294967295, %s633_s15   ;;  %s488_s17 = sadd.s32 4294967294, %s633_s15   ;;  %s633_s15 = sphi %s667_s15, %s778_s15   ;;  %s629_s14 = sphi %s665_s14, %s777_s14   ;;  %s625_s13 = sphi %s663_s13, %s776_s13   ;;  %s621_s12 = sphi %s661_s12, %s775_s12  }
   0x4   : > { %s686_s18 = sadd.s32 1, %s633_s15   ;;  %s91_s19 = sadd.s32 1, %s629_s14 }
   0x5   : > { %s88_s20 = ssub.s32 %s633_s15, %s686_s18  ;;  %p101_p0 = scmp.ne.s32.totalorder %s629_s14, %s625_s13 }
   0x6   : > { %p89_p1 = scmp.eq.s32.totalorder %s88_s20, 0  ;;  %p102_p2 = scmp.eq.s32.totalorder %s682_s16, 1 }
   0x7   : > { %p107_p3 = scmp.ne.s32.totalorder %s625_s13, %s621_s12  ;;  %p108_p4 = scmp.eq.s32.totalorder %s488_s17, 1 }
   0x8   : > { %s697_s21 = scalar_select %p89_p1, %s629_s14, %s91_s19  }
   0x9   : > { %p699_p5 = por %p102_p2, %p101_p0  ;;  %p703_p6 = por %p108_p4, %p107_p3 }
   0xa   : > { %p491_p7 = scmp.ge.s32.totalorder %s633_s15, 1  ;;  %p139_p8 = scmp.lt.s32.totalorder %s633_s15, 3 }
   0xc   : > { %p140_p9 = pnand %p491_p7, %p139_p8 }
   0xd   : > { %p162_p10 = scmp.lt.s32.totalorder (!%p140_p9), %s682_s16, 1  ;;  %s638_s6 = smov (!%p140_p9), 127  }
   0xe   : > { %143 = sbr.rel (%p140_p9) target bundleno = 356 (0x164), region = 32  ;;  %s639_s7 = smov (!%p140_p9), 126  }
   0xf   : > { %s159_s17 = sand.u32 (!%p140_p9), 1, %s625_s13   ;;  %s503_s20 = sshll.u32 (!%p140_p9), %s682_s16, 7 }
  0x10   : > { %s492_s19 = sshll.u32 (!%p140_p9), %s159_s17, 3  ;;  %s427_s28 = scalar_lea.hbm (!%p140_p9), %s772_s3, %s503_s20 }
  0x11   : > { %s161_s24 = scalar_lea.vmem (!%p140_p9), [#allocation2], %s492_s19  ;;  %s416_s29 = scalar_lea.sflag (!%p140_p9), [#allocation3], %s159_s17 }
  0x12   : > { %s429_s25 = sshll.u32 (!%p140_p9), %s161_s24, 4  ;;  %s640_s4 = smov (!%p140_p9), [#allocation2]   ;;  %s430_s25 = int_to_ptr.vmem [resolvable:$true] %s429_s25 }
  0x13   : > { %v635_v0 = vmov 0.0   ;;  %vm636_vm0 = vmmov 0   ;;  %v171_v1 = vld [vmem:[%s771_s2] sm:$0xff]  ;;  %s163_s26 = scalar_select %p162_p10, %s682_s16, 1  ;;  %v637_v2 = vmov 0   ;;  %vm185_vm1 = vcmask 1042432  }
  0x14   : > { %512 = vmatprep.subr.mxu0 %v635_v0  ;;  %514 = vmatprep.mubr.msk.f32.mxu0 %vm636_vm0, %v635_v0  ;;  %vm181_vm2 = vcmask 23552   ;;  %v166_v3 = vld [vmem:[%s770_s1] sm:$0xff]  ;;  %v494_v5 = vld [vmem:[%s770_s1 + $0x8] sm:$0xff]  ;;  %v495_v7 = vld [vmem:[%s770_s1 + $0x10] sm:$0xff]  ;;  %vm413_vm3 = vcmask 523264   ;;  %s577_s5 = sshll.u32 %s640_s4, 4  ;;  %s578_s5 = int_to_ptr.vmem [resolvable:$false] %s577_s5 }
  0x15   : > { %517 = vmatprep.subr.mxu1 %v635_v0  ;;  %519 = vmatprep.mubr.msk.f32.mxu1 %vm636_vm0, %v635_v0  ;;  %s493_s27 = sshll.u32 %s163_s26, 2  ;;  %s579_s16 = scalar_lea.vmem %s578_s5, 256 }
  0x16   : > { %571 = vset.pattern.permute.xlu1 %v637_v2  ;;  %572 = vset.pattern.permute.xlu0 %v637_v2  ;;  %s165_s30 = scalar_lea.vmem %s769_s0, %s493_s27  ;;  %p580_p0 = scmp.lt.s32.totalorder %s430_s25, %s578_s5 }
  0x17   : > { %174 = vperm.xlu1 %571, %v171_v1   ;;  %v177_v4 = vld [vmem:[%s165_s30] sm:$0x7]  ;;  %s573_s30 = scalar_lea.vmem %s430_s25, 128 }
  0x18   : > { %179 = vrot.lane.b32.xlu0 %v177_v4, %s638_s6  ;;  %518 = vmatpush3.msk.msra.mxu1 %vm185_vm1, %v177_v4  ;;  %p574_p11 = scmp.ne.s32.totalorder %s430_s25, %s573_s30  ;;  %p581_p1 = scmp.lt.s32.totalorder %s579_s16, %s573_s30 }
  0x19   : > { %520 = vmatmul.mubr.msk.f32.vlgmr.msra.gmra.mxu1 %vm181_vm2, %v166_v3 }
  0x1a   : > { %p575_p12 = pnand %p574_p11, %p699_p5  ;;  %p582_p2 = por %p581_p1, %p580_p0 }
  0x1c   : > { %333 = vrot.lane.b32.xlu0 %v177_v4, %s639_s7  ;;  %p576_p13 = pneg %p575_p12 }
  0x1e   : > { %p583_p3 = pnand %p582_p2, %p576_p13 }
  0x8a   : > { %v180_v6 = vpop.permute.xlu0 %179 }
  0x8b   : > { %513 = vmatpush3.msk.msra.mxu0 %vm185_vm1, %v180_v6 }
  0x8c   : > { %515 = vmatmul.mubr.msk.f32.vlgmr.msra.gmra.mxu0 %vm181_vm2, %v494_v5  ;;  %522 = vmatprep.subr.mxu0 %v635_v0 }
  0x8d   : > { %524 = vmatprep.mubr.msk.f32.mxu0 %vm636_vm0, %v635_v0 }
  0x8e   : > { %v334_v8 = vpop.permute.xlu0 %333 }
  0x8f   : > { %523 = vmatpush3.msk.msra.mxu0 %vm185_vm1, %v334_v8 }
  0x90   : > { %525 = vmatmul.mubr.msk.f32.vlgmr.msra.gmra.mxu0 %vm181_vm2, %v495_v7 }
  0x92   : > { %v175_v15 = vpop.permute.xlu1 %174 }
  0xd9   : > { %v329_v9 = vpop.f32.mrf.mxu1 }
  0xdb   : > { %v521_v10 = vpop.f32.mrf.mxu1 }
 0x14c   : > { %v254_v11 = vpop.f32.mrf.mxu0 }
 0x14d   : > { %v330_v13 = vadd.f32 %v329_v9, %v254_v11 }
 0x14e   : > { %v516_v12 = vpop.f32.mrf.mxu0 }
 0x150   : > { %v406_v14 = vpop.f32.mrf.mxu0 }
 0x151   : > { %v410_v16 = vadd.f32 %v406_v14, %v330_v13 }
 0x152   : > { %v526_v17 = vpop.f32.mrf.mxu0 }
 0x153   : > { %v411_v18 = vadd.f32 %v410_v16, %v175_v15 }
 0x155   : > { %v412_v19 = vmax.f32 %v411_v18, 0.0 }
 0x157   : > { %414 = vst.msk [vmem:[%s161_s24] sm:$0xff] %vm413_vm3, %v412_v19 }
 0x158   : > { %586 = shalt.err (!%p583_p3)
}
 0x159   : > { %s587_s6 = scalar_lea.hbm %s427_s28, 128  ;;  %s591_s9 = scalar_lea.hbm %s772_s3, 256 }
 0x15a   : > { %p588_p4 = scmp.ne.s32.totalorder %s427_s28, %s587_s6  ;;  %p592_p9 = scmp.lt.s32.totalorder %s427_s28, %s772_s3 }
 0x15b   : > { %p593_p10 = scmp.lt.s32.totalorder %s591_s9, %s587_s6 }
 0x15c   : > { %p589_p7 = pnand %p588_p4, %p699_p5 }
 0x15d   : > { %p594_p11 = por %p593_p10, %p592_p9 }
 0x15e   : > { %p590_p8 = pneg %p589_p7 }
 0x160   : > { %p595_p12 = pnand %p594_p11, %p590_p8 }
 0x162   : > { %598 = shalt.err (!%p595_p12)
}
 0x163   : > { %527 = dma.vmem_to_hbm [thread:$0]  (%p699_p5), %s430_s25, 128, %s427_s28, %s416_s29  }
 0x164 PF: > { %p533_p13 = scmp.ge.s32.totalorder %s633_s15, 2  ;;  %s441_s17 = sand.u32 1, %s621_s12  }
 0x165   : > { %s442_s19 = scalar_lea.sflag [#allocation3], %s441_s17 }
 0x166   : > { %p530_p0 = pnand %p533_p13, %p703_p6 }
 0x168   : > { %p531_p1 = pneg %p530_p0 }
 0x16a   : > { %616 = dma.done.wait (%p531_p1), %s442_s19, 128  }
 0x16b   : > { %618 = vsyncadd (%p531_p1), %s442_s19, 4294967168  ;;  %p13_p2 = scmp.ge.s32.totalorder %s686_s18, 4   ;;  %s775_s12 = smov %s625_s13 }
 0x16c   : > { %s776_s13 = smov %s629_s14  ;;  %s777_s14 = smov %s697_s21 }
 0x16d   : > { %s778_s15 = smov %s686_s18  ;;  %15 = sbr.rel (!%p13_p2) target bundleno = 3 (0x3), region = 69 }
 0x172   :  { %447 = vsyncpa [#allocation3], 1 }
 0x173   :  { %449 = vsyncpa [#allocation3 + $0x1], 1 }

</bundles_post_ra>
